<compile_context>
chip_gen: v5e
topology: v5e:2x2
jax: 0.10.0
libtpu: 0.0.40
codegen_flags: <defaults>
</compile_context>

<pallas_src>
import functools

import jax
import jax.numpy as jnp
from jax.experimental import pallas as pl
from jax.experimental.pallas import tpu as pltpu


def _round_up(x, m):
    return ((x + m - 1) // m) * m


# ---------------------------------------------------------------------------
# Kernel: fused 3-layer MLP for one batch tile.
# ---------------------------------------------------------------------------
def scene_decoder_kernel(x_ref, w1_ref, b1_ref, w2_ref, b2_ref, w3_ref, b3_ref,
                         o_ref):
    """x_ref: (TB, C_in); w*_ref: (in, out); b*_ref: (1, out) f32; o_ref: (TB, O_pad)."""
    x = x_ref[...]

    # Layer 1: Linear + ReLU (MXU matmul, f32 accumulation, f32 VPU epilogue).
    h = jnp.dot(x, w1_ref[...], preferred_element_type=jnp.float32)
    h = jnp.maximum(h + b1_ref[...], 0.0)

    # Layer 2: Linear + ReLU.
    h = jnp.dot(h.astype(w2_ref.dtype), w2_ref[...],
                preferred_element_type=jnp.float32)
    h = jnp.maximum(h + b2_ref[...], 0.0)

    # Layer 3: Linear (output channels lane-padded to a multiple of 128).
    out = jnp.dot(h.astype(w3_ref.dtype), w3_ref[...],
                  preferred_element_type=jnp.float32)
    out = out + b3_ref[...]

    o_ref[...] = out.astype(o_ref.dtype)


# ---------------------------------------------------------------------------
# One-time parameter preparation (lane-pad W3/b3, reshape biases, cast dtype).
# ---------------------------------------------------------------------------
def prepare_scene_decoder_params(params, *, num_objects, obj_dim,
                                 compute_dtype=jnp.float32):
    w1, b1, w2, b2, w3, b3 = params
    out_dim = (num_objects + 1) * obj_dim
    assert w3.shape[1] == out_dim
    H = w1.shape[1]
    out_pad = _round_up(out_dim, 128)

    w3p = jnp.pad(w3, ((0, 0), (0, out_pad - out_dim)))
    b3p = jnp.pad(b3, ((0, out_pad - out_dim),))

    return (
        w1.astype(compute_dtype),
        b1.reshape(1, H).astype(jnp.float32),      # biases stay f32 (VPU epilogue)
        w2.astype(compute_dtype),
        b2.reshape(1, H).astype(jnp.float32),
        w3p.astype(compute_dtype),
        b3p.reshape(1, out_pad).astype(jnp.float32),
    )


# ---------------------------------------------------------------------------
# Batch-tile selection.
# ---------------------------------------------------------------------------
_TB_CAP = 2048  # double-buffered tiles ~3 MiB at f32: fits v5e's 16 MiB default


def _select_tb(batch):
    """Pick a batch tile: big (amortize ~0.35 us/step), divides B if possible,
    multiple of 8, and giving >=2 grid steps so v7x megacore can split work."""
    if batch <= 16:
        # Single tile equal to the full batch dim (allowed even if not a
        # multiple of 8, since it equals the full array dim).
        return batch
    tb0 = min(_TB_CAP, _round_up(-(-batch // 2), 8))  # >= 2 grid steps
    # Prefer a tile that divides B exactly: no jnp.pad copy of activations.
    for tb in range(tb0, 7, -8):
        if batch % tb == 0:
            return tb
    return tb0  # no multiple-of-8 divisor: pad the ragged tail


# ---------------------------------------------------------------------------
# Forward wrapper.
# ---------------------------------------------------------------------------
def scene_decoder_forward(context_vector, prepared_params, *, num_objects,
                          obj_dim):
    """context_vector: (B, context_dim) -> (B, num_objects+1, obj_dim)."""
    w1, b1, w2, b2, w3p, b3p = prepared_params
    B, C_in = context_vector.shape
    H = w1.shape[1]
    out_pad = w3p.shape[1]
    out_dim = (num_objects + 1) * obj_dim

    tb = _select_tb(B)
    b_pad = _round_up(B, tb)

    x = context_vector.astype(w1.dtype)
    if b_pad != B:
        x = jnp.pad(x, ((0, b_pad - B), (0, 0)))

    out = pl.pallas_call(
        scene_decoder_kernel,
        out_shape=jax.ShapeDtypeStruct((b_pad, out_pad), context_vector.dtype),
        grid=(b_pad // tb,),
        in_specs=[
            pl.BlockSpec((tb, C_in), lambda i: (i, 0)),     # activations
            pl.BlockSpec((C_in, H), lambda i: (0, 0)),      # W1 (VMEM-resident)
            pl.BlockSpec((1, H), lambda i: (0, 0)),         # b1
            pl.BlockSpec((H, H), lambda i: (0, 0)),         # W2 (VMEM-resident)
            pl.BlockSpec((1, H), lambda i: (0, 0)),         # b2
            pl.BlockSpec((H, out_pad), lambda i: (0, 0)),   # W3 (VMEM-resident)
            pl.BlockSpec((1, out_pad), lambda i: (0, 0)),   # b3
        ],
        out_specs=pl.BlockSpec((tb, out_pad), lambda i: (i, 0)),
        compiler_params=pltpu.CompilerParams(
            dimension_semantics=("parallel",),
        ),
    )(x, w1, b1, w2, b2, w3p, b3p)

    # TODO(synk): consumers that accept the padded (B, out_pad) slab can skip
    # this slice/reshape pass over the output.
    out = out[:B, :out_dim]
    return out.reshape(B, num_objects + 1, obj_dim)


# ---------------------------------------------------------------------------
# Pure-JAX reference (and the recommended path for tiny batches).
# ---------------------------------------------------------------------------
def reference_scene_decoder(context_vector, params, *, num_objects, obj_dim):
    w1, b1, w2, b2, w3, b3 = params
    h = jnp.maximum(context_vector @ w1 + b1, 0.0)
    h = jnp.maximum(h @ w2 + b2, 0.0)
    out = h @ w3 + b3
    return out.reshape(context_vector.shape[0], num_objects + 1, obj_dim)


if __name__ == "__main__":
    # Module defaults: obj_dim=7, num_objects=5, hidden_dim=128, context_dim=64.
    obj_dim, num_objects, hidden_dim, context_dim = 7, 5, 128, 64
    output_dim = (num_objects + 1) * obj_dim  # 42

    key = jax.random.PRNGKey(0)
    kx, k1, k2, k3, k4, k5, k6, kx2 = jax.random.split(key, 8)

    # Deterministic synthetic Linear parameters, stored as (in, out) matrices.
    w1 = 0.1 * jax.random.normal(k1, (context_dim, hidden_dim), jnp.float32)
    b1 = 0.1 * jax.random.normal(k2, (hidden_dim,), jnp.float32)
    w2 = 0.1 * jax.random.normal(k3, (hidden_dim, hidden_dim), jnp.float32)
    b2 = 0.1 * jax.random.normal(k4, (hidden_dim,), jnp.float32)
    w3 = 0.1 * jax.random.normal(k5, (hidden_dim, output_dim), jnp.float32)
    b3 = 0.1 * jax.random.normal(k6, (output_dim,), jnp.float32)
    params = (w1, b1, w2, b2, w3, b3)

    prepared = prepare_scene_decoder_params(
        params, num_objects=num_objects, obj_dim=obj_dim,
        compute_dtype=jnp.float32)  # bf16 here halves traffic if accuracy allows

    fwd = functools.partial(scene_decoder_forward,
                            num_objects=num_objects, obj_dim=obj_dim)

    # Case 1: tiny batch (single full-batch tile, grid = 1).
    B = 2
    context = jax.random.normal(kx, (B, context_dim), dtype=jnp.float32)
    out = jax.block_until_ready(fwd(context, prepared))
    ref = reference_scene_decoder(context, params,
                                  num_objects=num_objects, obj_dim=obj_dim)
    assert out.shape == (B, num_objects + 1, obj_dim)
    assert jnp.allclose(out, ref, atol=1e-5, rtol=1e-5)

    # Case 2: small multi-tile batch (exercises the batch-tiled grid path).
    B2 = 40
    context2 = jax.random.normal(kx2, (B2, context_dim), dtype=jnp.float32)
    out2 = jax.block_until_ready(fwd(context2, prepared))
    ref2 = reference_scene_decoder(context2, params,
                                   num_objects=num_objects, obj_dim=obj_dim)
    assert out2.shape == (B2, num_objects + 1, obj_dim)
    assert jnp.allclose(out2, ref2, atol=1e-5, rtol=1e-5)

    print("KERNEL_OK")
</pallas_src>

<mosaic_0001>
module attributes {stable_mosaic.version = 11 : i64} {
  func.func @scene_decoder_kernel(%arg0: i32, %arg1: memref<2x64xf32, #tpu.memory_space<vmem>>, %arg2: memref<64x128xf32, #tpu.memory_space<vmem>>, %arg3: memref<1x128xf32, #tpu.memory_space<vmem>>, %arg4: memref<128x128xf32, #tpu.memory_space<vmem>>, %arg5: memref<1x128xf32, #tpu.memory_space<vmem>>, %arg6: memref<128x128xf32, #tpu.memory_space<vmem>>, %arg7: memref<1x128xf32, #tpu.memory_space<vmem>>, %arg8: memref<2x128xf32, #tpu.memory_space<vmem>>) attributes {dimension_semantics = [#tpu.dimension_semantics<parallel>], iteration_bounds = array<i64: 1>, scalar_prefetch = 0 : i64, scratch_operands = 0 : i64, tpu.core_type = #tpu.core_type<tc>, window_params = [{transform_indices = @transform_0, window_bounds = array<i64: 2, 64>}, {pipeline_mode = #tpu.pipeline_mode<synchronous>, transform_indices = @transform_1, window_bounds = array<i64: 64, 128>}, {pipeline_mode = #tpu.pipeline_mode<synchronous>, transform_indices = @transform_2, window_bounds = array<i64: 1, 128>}, {pipeline_mode = #tpu.pipeline_mode<synchronous>, transform_indices = @transform_3, window_bounds = array<i64: 128, 128>}, {pipeline_mode = #tpu.pipeline_mode<synchronous>, transform_indices = @transform_4, window_bounds = array<i64: 1, 128>}, {pipeline_mode = #tpu.pipeline_mode<synchronous>, transform_indices = @transform_5, window_bounds = array<i64: 128, 128>}, {pipeline_mode = #tpu.pipeline_mode<synchronous>, transform_indices = @transform_6, window_bounds = array<i64: 1, 128>}, {transform_indices = @transform_7, window_bounds = array<i64: 2, 128>}]} {
    %c0 = arith.constant 0 : index
    %c0_0 = arith.constant 0 : index
    %0 = vector.load %arg1[%c0, %c0_0] : memref<2x64xf32, #tpu.memory_space<vmem>>, vector<2x64xf32>
    %c0_1 = arith.constant 0 : index
    %c0_2 = arith.constant 0 : index
    %1 = vector.load %arg2[%c0_1, %c0_2] : memref<64x128xf32, #tpu.memory_space<vmem>>, vector<64x128xf32>
    %cst = arith.constant dense<0.000000e+00> : vector<2x128xf32>
    %2 = tpu.matmul %0, %1, %cst {dimension_numbers = #tpu.dot_dimension_numbers<[1], [0], [0], [1], [0, 0, 1, 1], [], []>} : vector<2x64xf32>, vector<64x128xf32>, vector<2x128xf32> -> vector<2x128xf32>
    %c0_3 = arith.constant 0 : index
    %c0_4 = arith.constant 0 : index
    %3 = vector.load %arg3[%c0_3, %c0_4] : memref<1x128xf32, #tpu.memory_space<vmem>>, vector<1x128xf32>
    %4 = vector.broadcast %3 : vector<1x128xf32> to vector<2x128xf32>
    %5 = arith.addf %2, %4 : vector<2x128xf32>
    %cst_5 = arith.constant 0.000000e+00 : f32
    %6 = vector.broadcast %cst_5 : f32 to vector<2x128xf32>
    %7 = arith.maximumf %5, %6 : vector<2x128xf32>
    %c0_6 = arith.constant 0 : index
    %c0_7 = arith.constant 0 : index
    %8 = vector.load %arg4[%c0_6, %c0_7] : memref<128x128xf32, #tpu.memory_space<vmem>>, vector<128x128xf32>
    %cst_8 = arith.constant dense<0.000000e+00> : vector<2x128xf32>
    %9 = tpu.matmul %7, %8, %cst_8 {dimension_numbers = #tpu.dot_dimension_numbers<[1], [0], [0], [1], [0, 0, 1, 1], [], []>} : vector<2x128xf32>, vector<128x128xf32>, vector<2x128xf32> -> vector<2x128xf32>
    %c0_9 = arith.constant 0 : index
    %c0_10 = arith.constant 0 : index
    %10 = vector.load %arg5[%c0_9, %c0_10] : memref<1x128xf32, #tpu.memory_space<vmem>>, vector<1x128xf32>
    %11 = vector.broadcast %10 : vector<1x128xf32> to vector<2x128xf32>
    %12 = arith.addf %9, %11 : vector<2x128xf32>
    %cst_11 = arith.constant 0.000000e+00 : f32
    %13 = vector.broadcast %cst_11 : f32 to vector<2x128xf32>
    %14 = arith.maximumf %12, %13 : vector<2x128xf32>
    %c0_12 = arith.constant 0 : index
    %c0_13 = arith.constant 0 : index
    %15 = vector.load %arg6[%c0_12, %c0_13] : memref<128x128xf32, #tpu.memory_space<vmem>>, vector<128x128xf32>
    %cst_14 = arith.constant dense<0.000000e+00> : vector<2x128xf32>
    %16 = tpu.matmul %14, %15, %cst_14 {dimension_numbers = #tpu.dot_dimension_numbers<[1], [0], [0], [1], [0, 0, 1, 1], [], []>} : vector<2x128xf32>, vector<128x128xf32>, vector<2x128xf32> -> vector<2x128xf32>
    %c0_15 = arith.constant 0 : index
    %c0_16 = arith.constant 0 : index
    %17 = vector.load %arg7[%c0_15, %c0_16] : memref<1x128xf32, #tpu.memory_space<vmem>>, vector<1x128xf32>
    %18 = vector.broadcast %17 : vector<1x128xf32> to vector<2x128xf32>
    %19 = arith.addf %16, %18 : vector<2x128xf32>
    %c0_17 = arith.constant 0 : index
    %c0_18 = arith.constant 0 : index
    %20 = vector.load %arg8[%c0_17, %c0_18] : memref<2x128xf32, #tpu.memory_space<vmem>>, vector<2x128xf32>
    tpu.vector_store %arg8[%c0_17, %c0_18], %19 {strides = array<i32>} : memref<2x128xf32, #tpu.memory_space<vmem>>, vector<2x128xf32>,
    return
  }
  func.func @transform_0(%arg0: i32) -> (i32, i32) {
    %c0_i32 = arith.constant 0 : i32
    %c0_i32_0 = arith.constant 0 : i32
    return %arg0, %c0_i32 : i32, i32
  }
  func.func @transform_1(%arg0: i32) -> (i32, i32) {
    %c0_i32 = arith.constant 0 : i32
    %c0_i32_0 = arith.constant 0 : i32
    %c0_i32_1 = arith.constant 0 : i32
    return %c0_i32, %c0_i32_0 : i32, i32
  }
  func.func @transform_2(%arg0: i32) -> (i32, i32) {
    %c0_i32 = arith.constant 0 : i32
    %c0_i32_0 = arith.constant 0 : i32
    %c0_i32_1 = arith.constant 0 : i32
    return %c0_i32, %c0_i32_0 : i32, i32
  }
  func.func @transform_3(%arg0: i32) -> (i32, i32) {
    %c0_i32 = arith.constant 0 : i32
    %c0_i32_0 = arith.constant 0 : i32
    %c0_i32_1 = arith.constant 0 : i32
    return %c0_i32, %c0_i32_0 : i32, i32
  }
  func.func @transform_4(%arg0: i32) -> (i32, i32) {
    %c0_i32 = arith.constant 0 : i32
    %c0_i32_0 = arith.constant 0 : i32
    %c0_i32_1 = arith.constant 0 : i32
    return %c0_i32, %c0_i32_0 : i32, i32
  }
  func.func @transform_5(%arg0: i32) -> (i32, i32) {
    %c0_i32 = arith.constant 0 : i32
    %c0_i32_0 = arith.constant 0 : i32
    %c0_i32_1 = arith.constant 0 : i32
    return %c0_i32, %c0_i32_0 : i32, i32
  }
  func.func @transform_6(%arg0: i32) -> (i32, i32) {
    %c0_i32 = arith.constant 0 : i32
    %c0_i32_0 = arith.constant 0 : i32
    %c0_i32_1 = arith.constant 0 : i32
    return %c0_i32, %c0_i32_0 : i32, i32
  }
  func.func @transform_7(%arg0: i32) -> (i32, i32) {
    %c0_i32 = arith.constant 0 : i32
    %c0_i32_0 = arith.constant 0 : i32
    return %arg0, %c0_i32 : i32, i32
  }
}

</mosaic_0001>

<bundles_post_ra>
// kernel: tpu_custom_call.1
= control target key start
LH: loop header
LB: loop body
LE: loop exit
PB: predicated region body
PF: predicated region fallthrough
CT: control target
= control target key end

     0   :  { %12 = vsyncpa [#allocation3], 0  ;;  %s437_s0 = inlined_call_operand.hbm [shape: f32[2,64], index: 0, kind: input, shape index: {}]   ;;  %s438_s1 = inlined_call_operand.hbm [shape: f32[64,128], index: 1, kind: input, shape index: {}]   ;;  %s439_s2 = inlined_call_operand.vmem [shape: f32[1,128], index: 2, kind: input, shape index: {}]   ;;  %s440_s3 = inlined_call_operand.hbm [shape: f32[128,128], index: 3, kind: input, shape index: {}]   ;;  %s441_s4 = inlined_call_operand.vmem [shape: f32[1,128], index: 4, kind: input, shape index: {}]   ;;  %s442_s5 = inlined_call_operand.hbm [shape: f32[128,128], index: 5, kind: input, shape index: {}]   ;;  %s443_s6 = inlined_call_operand.vmem [shape: f32[1,128], index: 6, kind: input, shape index: {}]   ;;  %s444_s7 = inlined_call_operand.hbm [shape: f32[2,128], index: 7, kind: output, shape index: {}]  }
   0x1   :  { %13 = vsyncpa [#allocation6], 0 }
   0x2   :  { %14 = vsyncpa [#allocation9], 0  ;;  %s31_s26 = sshll.u32 %s438_s1, 4  ;;  %s32_s26 = int_to_ptr.hbm [resolvable:$true] %s31_s26 }
   0x3   :  { %15 = vsyncpa [#allocation4], 0  ;;  %s366_s27 = smov [#allocation5]   ;;  %s21_s8 = sshll.u32 %s437_s0, 4  ;;  %s22_s8 = int_to_ptr.hbm [resolvable:$true] %s21_s8 }
   0x4   :  { %s33_s28 = sshll.u32 %s366_s27, 4  ;;  %s367_s9 = smov 128   ;;  %s34_s28 = int_to_ptr.vmem [resolvable:$true] %s33_s28 }
   0x5   :  { %s368_s10 = smov 8   ;;  %s369_s11 = smov [#allocation2]  }
   0x6   :  { %39 = dma.hbm_to_vmem [thread:$0]  %s32_s26, 1024, %s34_s28, [#allocation6], %s367_s9, %s367_s9, %s368_s10  }
   0x7   :  { %s23_s12 = sshll.u32 %s369_s11, 4  ;;  %s46_s15 = sshll.u32 %s440_s3, 4  ;;  %s24_s12 = int_to_ptr.vmem [resolvable:$true] %s23_s12  ;;  %s47_s15 = int_to_ptr.hbm [resolvable:$true] %s46_s15 }
   0x8   :  { %26 = dma.hbm_to_vmem [thread:$0]  %s22_s8, 32, %s24_s12, [#allocation3]  }
   0x9   :  { %s61_s17 = sshll.u32 %s442_s5, 4  ;;  %s370_s18 = smov [#allocation7]   ;;  %s62_s17 = int_to_ptr.hbm [resolvable:$true] %s61_s17 }
   0xa   :  { %s48_s19 = sshll.u32 %s370_s18, 4  ;;  %s371_s0 = smov [#allocation8]   ;;  %s49_s19 = int_to_ptr.vmem [resolvable:$true] %s48_s19 }
   0xb   :  { %54 = dma.hbm_to_vmem [thread:$0]  %s47_s15, 2048, %s49_s19, [#allocation6], %s367_s9, %s367_s9, %s368_s10  }
   0xc   :  { %s63_s20 = sshll.u32 %s371_s0, 4  ;;  %s64_s20 = int_to_ptr.vmem [resolvable:$true] %s63_s20 }
   0xd   :  { %69 = dma.hbm_to_vmem [thread:$0]  %s62_s17, 2048, %s64_s20, [#allocation9], %s367_s9, %s367_s9, %s368_s10  }
   0xe   :  { %358 = dma.done.wait [#allocation3], 32  }
   0xf   :  { %359 = vsyncadd [#allocation3], 4294967264 }
  0x10   :  { %360 = dma.done.wait [#allocation6], 3072  }
  0x11   :  { %361 = vsyncadd [#allocation6], 4294964224 }
  0x12   :  { %362 = dma.done.wait [#allocation9], 2048  }
  0x13   :  { %363 = vsyncadd [#allocation9], 4294965248  ;;  %v96_v0 = vld [vmem:[#allocation5 + $0x38] sm:$0xff]  ;;  %v95_v1 = vld [vmem:[#allocation5 + $0x30] sm:$0xff]  ;;  %vm101_vm0 = vcmask 523264   ;;  %s372_s24 = smov [#allocation10]  }
  0x14   :  { %113 = vmatpush.msra.mxu0 %v96_v0  ;;  %v94_v2 = vld [vmem:[#allocation5 + $0x28] sm:$0xff]  ;;  %v141_v3 = vld [vmem:[#allocation7 + $0x78] sm:$0xff]  ;;  %v140_v4 = vld [vmem:[#allocation7 + $0x70] sm:$0xff]  ;;  %s213_s25 = sshll.u32 %s372_s24, 4  ;;  %s215_s28 = sshll.u32 %s444_s7, 4  ;;  %s214_s25 = int_to_ptr.vmem [resolvable:$true] %s213_s25  ;;  %s216_s28 = int_to_ptr.hbm [resolvable:$true] %s215_s28 }
  0x15   :  { %v93_v5 = vld [vmem:[#allocation5 + $0x20] sm:$0xff]  ;;  %146 = vmatpush.msra.mxu1 %v141_v3  ;;  %v139_v6 = vld [vmem:[#allocation7 + $0x68] sm:$0xff]  ;;  %v92_v7 = vld [vmem:[#allocation5 + $0x18] sm:$0xff] }
  0x16   :  { %114 = vmatpush.msra.mxu0 %v95_v1  ;;  %v138_v8 = vld [vmem:[#allocation7 + $0x60] sm:$0xff]  ;;  %v91_v9 = vld [vmem:[#allocation5 + $0x10] sm:$0xff]  ;;  %v137_v10 = vld [vmem:[#allocation7 + $0x58] sm:$0xff] }
  0x17   :  { %147 = vmatpush.msra.mxu1 %v140_v4  ;;  %v90_v11 = vld [vmem:[#allocation5 + $0x8] sm:$0xff]  ;;  %v136_v12 = vld [vmem:[#allocation7 + $0x50] sm:$0xff]  ;;  %v89_v13 = vld [vmem:[#allocation5] sm:$0xff] }
  0x18   :  { %115 = vmatpush.msra.mxu0 %v94_v2  ;;  %v88_v14 = vld [vmem:[#allocation2] sm:$0x3]  ;;  %v135_v15 = vld [vmem:[#allocation7 + $0x48] sm:$0xff]  ;;  %v134_v16 = vld [vmem:[#allocation7 + $0x40] sm:$0xff] }
  0x19   :  { %148 = vmatpush.msra.mxu1 %v139_v6  ;;  %v133_v17 = vld [vmem:[#allocation7 + $0x38] sm:$0xff]  ;;  %v132_v18 = vld [vmem:[#allocation7 + $0x30] sm:$0xff]  ;;  %v131_v19 = vld [vmem:[#allocation7 + $0x28] sm:$0xff] }
  0x1a   :  { %116 = vmatpush.msra.mxu0 %v93_v5  ;;  %v130_v20 = vld [vmem:[#allocation7 + $0x20] sm:$0xff]  ;;  %v129_v21 = vld [vmem:[#allocation7 + $0x18] sm:$0xff]  ;;  %v128_v22 = vld [vmem:[#allocation7 + $0x10] sm:$0xff] }
  0x1b   :  { %149 = vmatpush.msra.mxu1 %v138_v8  ;;  %v127_v23 = vld [vmem:[#allocation7 + $0x8] sm:$0xff]  ;;  %v126_v24 = vld [vmem:[#allocation7] sm:$0xff]  ;;  %v182_v25 = vld [vmem:[#allocation8 + $0x78] sm:$0xff] }
  0x1c   :  { %117 = vmatpush.msra.mxu0 %v92_v7  ;;  %v181_v26 = vld [vmem:[#allocation8 + $0x70] sm:$0xff]  ;;  %187 = vmatpush.msra.mxu2 %v182_v25  ;;  %v180_v27 = vld [vmem:[#allocation8 + $0x68] sm:$0xff]  ;;  %v179_v28 = vld [vmem:[#allocation8 + $0x60] sm:$0xff] }
  0x1d   :  { %150 = vmatpush.msra.mxu1 %v137_v10  ;;  %v178_v29 = vld [vmem:[#allocation8 + $0x58] sm:$0xff]  ;;  %v177_v30 = vld [vmem:[#allocation8 + $0x50] sm:$0xff]  ;;  %v176_v31 = vld [vmem:[#allocation8 + $0x48] sm:$0xff] }
  0x1e   :  { %118 = vmatpush.msra.mxu0 %v91_v9  ;;  %188 = vmatpush.msra.mxu2 %v181_v26  ;;  %v175_v32 = vld [vmem:[#allocation8 + $0x40] sm:$0xff]  ;;  %v174_v33 = vld [vmem:[#allocation8 + $0x38] sm:$0xff]  ;;  %v173_v34 = vld [vmem:[#allocation8 + $0x30] sm:$0xff] }
  0x1f   :  { %151 = vmatpush.msra.mxu1 %v136_v12  ;;  %v172_v35 = vld [vmem:[#allocation8 + $0x28] sm:$0xff]  ;;  %v171_v36 = vld [vmem:[#allocation8 + $0x20] sm:$0xff]  ;;  %v170_v37 = vld [vmem:[#allocation8 + $0x18] sm:$0xff] }
  0x20   :  { %119 = vmatpush.msra.mxu0 %v90_v11  ;;  %189 = vmatpush.msra.mxu2 %v180_v27  ;;  %v235_v38 = vld [vmem:[%s439_s2] ss:$0 sm:$0xff]  ;;  %v169_v42 = vld [vmem:[#allocation8 + $0x10] sm:$0xff]  ;;  %v168_v43 = vld [vmem:[#allocation8 + $0x8] sm:$0xff] }
  0x21   :  { %152 = vmatpush.msra.mxu1 %v135_v15  ;;  %v167_v44 = vld [vmem:[#allocation8] sm:$0xff]  ;;  %v236_v45 = vld [vmem:[%s441_s4] ss:$0 sm:$0xff] }
  0x22   :  { %120 = vmatpush.msra.mxu0 %v89_v13  ;;  %190 = vmatpush.msra.mxu2 %v179_v28  ;;  %v237_v49 = vld [vmem:[%s443_s6] ss:$0 sm:$0xff] }
  0x23   :  { %227 = vmatmul.msk.f32.vlgmr.msra.gmra.mxu0 %vm101_vm0, %v88_v14  ;;  %153 = vmatpush.msra.mxu1 %v134_v16 }
  0x24   :  { %191 = vmatpush.msra.mxu2 %v178_v29 }
  0x25   :  { %154 = vmatpush.msra.mxu1 %v133_v17 }
  0x26   :  { %192 = vmatpush.msra.mxu2 %v177_v30 }
  0x27   :  { %155 = vmatpush.msra.mxu1 %v132_v18 }
  0x28   :  { %193 = vmatpush.msra.mxu2 %v176_v31 }
  0x29   :  { %156 = vmatpush.msra.mxu1 %v131_v19 }
  0x2a   :  { %194 = vmatpush.msra.mxu2 %v175_v32 }
  0x2b   :  { %157 = vmatpush.msra.mxu1 %v130_v20 }
  0x2c   :  { %195 = vmatpush.msra.mxu2 %v174_v33 }
  0x2d   :  { %158 = vmatpush.msra.mxu1 %v129_v21 }
  0x2e   :  { %196 = vmatpush.msra.mxu2 %v173_v34 }
  0x2f   :  { %159 = vmatpush.msra.mxu1 %v128_v22 }
  0x30   :  { %197 = vmatpush.msra.mxu2 %v172_v35 }
  0x31   :  { %160 = vmatpush.msra.mxu1 %v127_v23 }
  0x32   :  { %198 = vmatpush.msra.mxu2 %v171_v36 }
  0x33   :  { %161 = vmatpush.msra.mxu1 %v126_v24 }
  0x34   :  { %199 = vmatpush.msra.mxu2 %v170_v37 }
  0x36   :  { %200 = vmatpush.msra.mxu2 %v169_v42 }
  0x38   :  { %201 = vmatpush.msra.mxu2 %v168_v43 }
  0x3a   :  { %202 = vmatpush.msra.mxu2 %v167_v44 }
  0xa0   :  { %v122_v39 = vpop.f32.mrf.mxu0 }
  0xa1   :  { %v123_v40 = vadd.f32 %v235_v38, %v122_v39 }
  0xa3   :  { %v125_v41 = vmax.f32 %v123_v40, 0.0 }
  0xa5   :  { %162 = vmatmul.f32.vlgmr.msra.gmra.mxu1 %v125_v41 }
 0x122   :  { %v163_v46 = vpop.f32.mrf.mxu1 }
 0x123   :  { %v164_v47 = vadd.f32 %v236_v45, %v163_v46 }
 0x125   :  { %v166_v48 = vmax.f32 %v164_v47, 0.0 }
 0x127   :  { %203 = vmatmul.f32.vlgmr.msra.gmra.mxu2 %v166_v48 }
 0x1aa   :  { %v204_v50 = vpop.f32.mrf.mxu2 }
 0x1ab   :  { %v205_v51 = vadd.f32 %v237_v49, %v204_v50 }
 0x1ad   :  { %207 = vst [vmem:[#allocation10] sm:$0x3] %v205_v51 }
 0x1ae   :  { %218 = dma.vmem_to_hbm [thread:$0]  %s214_s25, 32, %s216_s28, [#allocation4]  }
 0x1af   :  { %364 = dma.done.wait [#allocation4], 32  }
 0x1b0   :  { %365 = vsyncadd [#allocation4], 4294967264 }
 0x1b1   :  { %223 = vsyncpa [#allocation3], 1 }
 0x1b2   :  { %224 = vsyncpa [#allocation6], 1 }
 0x1b3   :  { %225 = vsyncpa [#allocation9], 1 }
 0x1b4   :  { %226 = vsyncpa [#allocation4], 1 }

</bundles_post_ra>
